<compile_context>
chip_gen: v6e
topology: v6e:2x2x1
jax: 0.10.0
libtpu: 0.0.40
codegen_flags: <defaults>
</compile_context>

<pallas_src>
import functools
import math

import jax
import jax.numpy as jnp
from jax import lax
from jax.experimental import pallas as pl
from jax.experimental.pallas import tpu as pltpu


# TODO(synk): Mosaic does not guarantee a lowering for lax.acos_p / lax.cos_p, so
# acos and cos(m*theta) use high-precision polynomials (|err| ~ 1e-7) built only
# from add/mul/sqrt/select; they run on a (tb, 1) vector only, so cost is ~nil.
def _acos_poly(x):
    # Abramowitz & Stegun 4.4.45 (7th-order variant), |err| <= 2e-8 on [0, 1].
    a = jnp.abs(x)
    p = jnp.float32(-0.0012624911)
    for coef in (0.0066700901, -0.0170881256, 0.0308918810,
                 -0.0501743046, 0.0889789874, -0.2145988016, 1.5707963050):
        p = p * a + jnp.float32(coef)
    r = p * jnp.sqrt(jnp.maximum(1.0 - a, 0.0))
    return jnp.where(x >= 0.0, r, jnp.float32(math.pi) - r)


def _sin_cos_taylor(u):
    # Taylor series about 0; accurate to ~1.5e-7 for |u| <= pi, covering
    # (m - 1) * theta for 0 <= m <= 2 (SphereFace default m = 1.35).
    u2 = u * u
    c = jnp.float32(1.0 / 20922789888000.0)            # 1/16!
    for coef in (-1.0 / 87178291200.0, 1.0 / 479001600.0, -1.0 / 3628800.0,
                 1.0 / 40320.0, -1.0 / 720.0, 1.0 / 24.0, -0.5, 1.0):
        c = c * u2 + jnp.float32(coef)
    s = jnp.float32(1.0 / 355687428096000.0)           # 1/17!
    for coef in (-1.0 / 1307674368000.0, 1.0 / 6227020800.0, -1.0 / 39916800.0,
                 1.0 / 362880.0, -1.0 / 5040.0, 1.0 / 120.0, -1.0 / 6.0, 1.0):
        s = s * u2 + jnp.float32(coef)
    return u * s, c


def _inv_norm(v):
    # F.normalize semantics: v / max(||v||, 1e-12) == v * rsqrt(max(||v||^2, 1e-24)).
    # rsqrt uses the otherwise-idle EUP slot; one Newton-Raphson step restores
    # full f32 accuracy even if the hardware rsqrt is approximate.
    ns = jnp.maximum(jnp.sum(v * v, axis=-1, keepdims=True), jnp.float32(1e-24))
    inv = lax.rsqrt(ns)
    inv = inv * (jnp.float32(1.5) - jnp.float32(0.5) * ns * inv * inv)
    return inv


def _sphereface_kernel(*refs, s, m, apply_margin):
    if apply_margin:
        x_ref, w_ref, lbl_ref, out_ref = refs
    else:
        x_ref, w_ref, out_ref = refs

    # Normalize the streamed W tile in f32 (each tile is visited once per batch
    # tile; with the default tb the whole batch is a single tile, so exactly
    # once overall), then feed the MXU in the resident-x dtype (bf16 default).
    w = w_ref[...].astype(jnp.float32)                   # (tc, F)
    wn = (w * _inv_norm(w)).astype(x_ref.dtype)

    # logits = xn @ wn.T : contract the feature axis on the MXU, f32 accumulation.
    logits = lax.dot_general(x_ref[...], wn,
                             (((1,), (1,)), ((), ())),
                             preferred_element_type=jnp.float32)   # (tb, tc)

    if not apply_margin:                                  # label is None path
        out_ref[...] = logits.astype(out_ref.dtype)
        return

    tc = w_ref.shape[0]
    ci = pl.program_id(1)                                 # class-tile index
    lbl_local = lbl_ref[...] - ci * tc                    # (tb, 1) local class id
    local_cls = lax.broadcasted_iota(jnp.int32, logits.shape, 1)
    one_hot = local_cls == lbl_local                      # scatter_(1, label, 1)

    # Angular margin only for the target class: pick the target-class cosine per
    # row (masked row reduce -> (tb, 1)), then run acos / cos(m*theta) on that
    # vector only.  Rows whose label is outside this class tile get an all-False
    # one_hot, so the computed target is never selected for them.
    c_tgt = jnp.sum(jnp.where(one_hot, logits, 0.0), axis=-1, keepdims=True)
    c_tgt = jnp.clip(c_tgt, -1.0 + 1e-7, 1.0 - 1e-7)
    theta = _acos_poly(c_tgt)                             # (tb, 1)
    # cos(m*theta) = cos(theta)cos((m-1)theta) - sin(theta)sin((m-1)theta),
    # with cos(theta) = c_tgt and sin(theta) = sqrt(1 - c_tgt^2) >= 0.
    sin_u, cos_u = _sin_cos_taylor(jnp.float32(m - 1.0) * theta)
    sin_t = jnp.sqrt(jnp.maximum(1.0 - c_tgt * c_tgt, 0.0))
    target = c_tgt * cos_u - sin_t * sin_u                # (tb, 1)

    out = jnp.where(one_hot, target, logits) * jnp.float32(s)
    out_ref[...] = out.astype(out_ref.dtype)


def sphereface_forward(x, W, label=None, *, s=30.0, m=1.35,
                       tb=1024, tc=1024, mxu_dtype=jnp.bfloat16):
    """Pallas implementation of SphereFace.forward(input, label).

    tb / tc: batch / class tile sizes (clipped to the problem; tb multiple of 8,
             tc multiple of 128 unless they equal the full dimension).
    mxu_dtype: jnp.bfloat16 (default, fast bf16-fed MXU with f32 accumulation)
               or jnp.float32 (exact).
    """
    B, F = x.shape
    C, F2 = W.shape
    assert F == F2
    if not (0.0 <= m <= 2.0):
        raise ValueError("cos(m*theta) Taylor expansion is only accurate for 0 <= m <= 2")

    # Pre-normalize x once in the wrapper (one cheap B x F op) and cast to the
    # MXU feed dtype; this is the VMEM-resident operand.  W stays f32 in HBM
    # (streamed once -> a wrapper-side cast would add a full W read+write).
    xf = x.astype(jnp.float32)
    xn = xf / jnp.maximum(jnp.linalg.norm(xf, axis=-1, keepdims=True), 1e-12)
    xn = xn.astype(mxu_dtype)

    # Tile sizes: no padding of any operand / output.  Blocks are either full
    # array dims or (8,128)-aligned; ragged last blocks are handled by Pallas
    # (OOB reads unspecified, OOB writes dropped) and cannot contaminate
    # in-bounds results because all kernel math is row/column local.
    if B <= tb:
        tb = B
    else:
        tb = max(8, (int(tb) // 8) * 8)
    if C <= tc:
        tc = C
    else:
        tc = max(128, (int(tc) // 128) * 128)

    grid = (pl.cdiv(B, tb), pl.cdiv(C, tc))               # (batch tiles, class tiles)

    x_spec = pl.BlockSpec((tb, F), lambda bi, ci: (bi, 0))    # resident over ci
    w_spec = pl.BlockSpec((tc, F), lambda bi, ci: (ci, 0))    # streamed once
    out_spec = pl.BlockSpec((tb, tc), lambda bi, ci: (bi, ci))

    apply_margin = label is not None
    if apply_margin:
        lbl = label.reshape(-1, 1).astype(jnp.int32)
        in_specs = [x_spec, w_spec, pl.BlockSpec((tb, 1), lambda bi, ci: (bi, 0))]
        args = (xn, W, lbl)
    else:
        in_specs = [x_spec, w_spec]                        # no dummy label operand
        args = (xn, W)

    kernel = functools.partial(_sphereface_kernel, s=float(s), m=float(m),
                               apply_margin=apply_margin)

    return pl.pallas_call(
        kernel,
        out_shape=jax.ShapeDtypeStruct((B, C), jnp.float32),
        grid=grid,
        in_specs=in_specs,
        out_specs=out_spec,
        compiler_params=pltpu.CompilerParams(
            # All output tiles are independent -> both axes parallel; the long
            # class axis gives v7x megacore its sharding.
            dimension_semantics=("parallel", "parallel"),
            vmem_limit_bytes=48 * 1024 * 1024,             # headroom on 64 MiB v7x
        ),
    )(*args)


def _reference(x, W, label, s, m, mxu_dtype=jnp.float32):
    xn = x / jnp.maximum(jnp.linalg.norm(x, axis=-1, keepdims=True), 1e-12)
    wn = W / jnp.maximum(jnp.linalg.norm(W, axis=-1, keepdims=True), 1e-12)
    logits = lax.dot_general(xn.astype(mxu_dtype), wn.astype(mxu_dtype),
                             (((1,), (1,)), ((), ())),
                             preferred_element_type=jnp.float32)
    if label is None:
        return logits
    theta = jnp.arccos(jnp.clip(logits, -1.0 + 1e-7, 1.0 - 1e-7))
    target = jnp.cos(m * theta)
    one_hot = jax.nn.one_hot(label, logits.shape[1], dtype=logits.dtype)
    return (logits * (1 - one_hot) + target * one_hot) * s


if __name__ == "__main__":
    key = jax.random.PRNGKey(0)

    # --- small single-tile case (num_features=64, num_classes=32) ---
    B, F, C = 16, 64, 32
    kx, kw, kl = jax.random.split(key, 3)
    x = jax.random.normal(kx, (B, F), dtype=jnp.float32)
    bound = math.sqrt(6.0 / (F + C))                      # nn.init.xavier_uniform_
    W = jax.random.uniform(kw, (C, F), jnp.float32, -bound, bound)
    label = jax.random.randint(kl, (B,), 0, C, dtype=jnp.int32)

    # exact f32 MXU feed path (margin + logits-only)
    out = sphereface_forward(x, W, label, s=30.0, m=1.35, mxu_dtype=jnp.float32)
    jax.block_until_ready(out)
    logits_only = sphereface_forward(x, W, None, mxu_dtype=jnp.float32)
    jax.block_until_ready(logits_only)
    ref = _reference(x, W, label, 30.0, 1.35)
    ref_logits = _reference(x, W, None, 30.0, 1.35)
    assert out.shape == (B, C) and logits_only.shape == (B, C)
    assert jnp.allclose(out, ref, atol=2e-3, rtol=1e-4)
    assert jnp.allclose(logits_only, ref_logits, atol=2e-4, rtol=1e-4)

    # default bf16-fed MXU path, compared against a matching bf16 reference
    out_bf16 = sphereface_forward(x, W, label, s=30.0, m=1.35)
    jax.block_until_ready(out_bf16)
    ref_bf16 = _reference(x, W, label, 30.0, 1.35, mxu_dtype=jnp.bfloat16)
    assert jnp.allclose(out_bf16, ref_bf16, atol=3e-2, rtol=1e-2)

    # --- multi-tile with ragged edges and NO padding anywhere: 3 batch tiles x
    # 3 class tiles, last tile partial on both axes (exercises the class-tile
    # offset in the one-hot, x-resident reuse across class tiles, and the
    # dropped OOB writes of ragged blocks) ---
    Bb, Fb, Cb = 40, 96, 300
    k2x, k2w, k2l = jax.random.split(jax.random.PRNGKey(1), 3)
    x2 = jax.random.normal(k2x, (Bb, Fb), jnp.float32)
    bound2 = math.sqrt(6.0 / (Fb + Cb))
    W2 = jax.random.uniform(k2w, (Cb, Fb), jnp.float32, -bound2, bound2)
    l2 = jax.random.randint(k2l, (Bb,), 0, Cb, dtype=jnp.int32)

    out2 = sphereface_forward(x2, W2, l2, s=30.0, m=1.35, tb=16, tc=128,
                              mxu_dtype=jnp.float32)
    jax.block_until_ready(out2)
    ref2 = _reference(x2, W2, l2, 30.0, 1.35)
    assert out2.shape == (Bb, Cb)
    assert jnp.allclose(out2, ref2, atol=2e-3, rtol=1e-4)

    out2_bf16 = sphereface_forward(x2, W2, l2, s=30.0, m=1.35, tb=16, tc=128)
    jax.block_until_ready(out2_bf16)
    ref2_bf16 = _reference(x2, W2, l2, 30.0, 1.35, mxu_dtype=jnp.bfloat16)
    assert jnp.allclose(out2_bf16, ref2_bf16, atol=3e-2, rtol=1e-2)

    print("KERNEL_OK")
</pallas_src>

<mosaic_0001>
module attributes {stable_mosaic.version = 11 : i64} {
  func.func @_sphereface_kernel(%arg0: i32, %arg1: i32, %arg2: memref<16x64xf32, #tpu.memory_space<vmem>>, %arg3: memref<32x64xf32, #tpu.memory_space<vmem>>, %arg4: memref<16x1xi32, #tpu.memory_space<vmem>>, %arg5: memref<16x32xf32, #tpu.memory_space<vmem>>) attributes {dimension_semantics = [#tpu.dimension_semantics<parallel>, #tpu.dimension_semantics<parallel>], iteration_bounds = array<i64: 1, 1>, scalar_prefetch = 0 : i64, scratch_operands = 0 : i64, tpu.core_type = #tpu.core_type<tc>, window_params = [{transform_indices = @transform_0, window_bounds = array<i64: 16, 64>}, {transform_indices = @transform_1, window_bounds = array<i64: 32, 64>}, {transform_indices = @transform_2, window_bounds = array<i64: 16, 1>}, {transform_indices = @transform_3, window_bounds = array<i64: 16, 32>}]} {
    %c0 = arith.constant 0 : index
    %c0_0 = arith.constant 0 : index
    %0 = vector.load %arg3[%c0, %c0_0] : memref<32x64xf32, #tpu.memory_space<vmem>>, vector<32x64xf32>
    %1 = arith.mulf %0, %0 : vector<32x64xf32>
    %cst = arith.constant dense<0.000000e+00> : vector<32xf32>
    %2 = vector.multi_reduction <add>, %1, %cst [1] : vector<32x64xf32> to vector<32xf32>
    %3 = vector.shape_cast %2 : vector<32xf32> to vector<32x1xf32>
    %cst_1 = arith.constant 1.000000e-24 : f32
    %4 = vector.broadcast %cst_1 : f32 to vector<32x1xf32>
    %5 = arith.maximumf %3, %4 : vector<32x1xf32>
    %6 = math.rsqrt %5 : vector<32x1xf32>
    %cst_2 = arith.constant 5.000000e-01 : f32
    %7 = vector.broadcast %cst_2 : f32 to vector<32x1xf32>
    %8 = arith.mulf %7, %5 : vector<32x1xf32>
    %9 = arith.mulf %8, %6 : vector<32x1xf32>
    %10 = arith.mulf %9, %6 : vector<32x1xf32>
    %cst_3 = arith.constant 1.500000e+00 : f32
    %11 = vector.broadcast %cst_3 : f32 to vector<32x1xf32>
    %12 = arith.subf %11, %10 : vector<32x1xf32>
    %13 = arith.mulf %6, %12 : vector<32x1xf32>
    %14 = vector.broadcast %13 : vector<32x1xf32> to vector<32x64xf32>
    %15 = arith.mulf %0, %14 : vector<32x64xf32>
    %c0_4 = arith.constant 0 : index
    %c0_5 = arith.constant 0 : index
    %16 = vector.load %arg2[%c0_4, %c0_5] : memref<16x64xf32, #tpu.memory_space<vmem>>, vector<16x64xf32>
    %cst_6 = arith.constant dense<0.000000e+00> : vector<16x32xf32>
    %17 = tpu.matmul %16, %15, %cst_6 {dimension_numbers = #tpu.dot_dimension_numbers<[1], [1], [0], [0], [0, 0, 1, 0], [], []>} : vector<16x64xf32>, vector<32x64xf32>, vector<16x32xf32> -> vector<16x32xf32>
    %c0_7 = arith.constant 0 : index
    %c0_8 = arith.constant 0 : index
    %18 = vector.load %arg4[%c0_7, %c0_8] : memref<16x1xi32, #tpu.memory_space<vmem>>, vector<16x1xi32>
    %c32_i32 = arith.constant 32 : i32
    %19 = arith.muli %arg1, %c32_i32 : i32
    %20 = vector.broadcast %19 : i32 to vector<16x1xi32>
    %21 = arith.subi %18, %20 : vector<16x1xi32>
    %22 = tpu.iota {dimensions = array<i32: 1>} : vector<16x32xi32>
    %23 = vector.broadcast %21 : vector<16x1xi32> to vector<16x32xi32>
    %24 = arith.cmpi eq, %22, %23 : vector<16x32xi32>
    %cst_9 = arith.constant 0.000000e+00 : f32
    %25 = vector.broadcast %cst_9 : f32 to vector<16x32xf32>
    %26 = arith.select %24, %17, %25 : vector<16x32xi1>, vector<16x32xf32>
    %cst_10 = arith.constant dense<0.000000e+00> : vector<16xf32>
    %27 = vector.multi_reduction <add>, %26, %cst_10 [1] : vector<16x32xf32> to vector<16xf32>
    %28 = vector.shape_cast %27 : vector<16xf32> to vector<16x1xf32>
    %cst_11 = arith.constant -0.99999988 : f32
    %cst_12 = arith.constant 0.99999988 : f32
    %29 = vector.broadcast %cst_11 : f32 to vector<16x1xf32>
    %30 = arith.maximumf %29, %28 : vector<16x1xf32>
    %31 = vector.broadcast %cst_12 : f32 to vector<16x1xf32>
    %32 = arith.minimumf %31, %30 : vector<16x1xf32>
    %33 = math.absf %32 : vector<16x1xf32>
    %cst_13 = arith.constant -0.0012624911 : f32
    %34 = vector.broadcast %cst_13 : f32 to vector<16x1xf32>
    %35 = arith.mulf %34, %33 : vector<16x1xf32>
    %cst_14 = arith.constant 6.670090e-03 : f32
    %36 = vector.broadcast %cst_14 : f32 to vector<16x1xf32>
    %37 = arith.addf %35, %36 : vector<16x1xf32>
    %38 = arith.mulf %37, %33 : vector<16x1xf32>
    %cst_15 = arith.constant -0.0170881264 : f32
    %39 = vector.broadcast %cst_15 : f32 to vector<16x1xf32>
    %40 = arith.addf %38, %39 : vector<16x1xf32>
    %41 = arith.mulf %40, %33 : vector<16x1xf32>
    %cst_16 = arith.constant 0.0308918804 : f32
    %42 = vector.broadcast %cst_16 : f32 to vector<16x1xf32>
    %43 = arith.addf %41, %42 : vector<16x1xf32>
    %44 = arith.mulf %43, %33 : vector<16x1xf32>
    %cst_17 = arith.constant -0.0501743034 : f32
    %45 = vector.broadcast %cst_17 : f32 to vector<16x1xf32>
    %46 = arith.addf %44, %45 : vector<16x1xf32>
    %47 = arith.mulf %46, %33 : vector<16x1xf32>
    %cst_18 = arith.constant 0.0889789909 : f32
    %48 = vector.broadcast %cst_18 : f32 to vector<16x1xf32>
    %49 = arith.addf %47, %48 : vector<16x1xf32>
    %50 = arith.mulf %49, %33 : vector<16x1xf32>
    %cst_19 = arith.constant -0.214598805 : f32
    %51 = vector.broadcast %cst_19 : f32 to vector<16x1xf32>
    %52 = arith.addf %50, %51 : vector<16x1xf32>
    %53 = arith.mulf %52, %33 : vector<16x1xf32>
    %cst_20 = arith.constant 1.57079625 : f32
    %54 = vector.broadcast %cst_20 : f32 to vector<16x1xf32>
    %55 = arith.addf %53, %54 : vector<16x1xf32>
    %cst_21 = arith.constant 1.000000e+00 : f32
    %56 = vector.broadcast %cst_21 : f32 to vector<16x1xf32>
    %57 = arith.subf %56, %33 : vector<16x1xf32>
    %cst_22 = arith.constant 0.000000e+00 : f32
    %58 = vector.broadcast %cst_22 : f32 to vector<16x1xf32>
    %59 = arith.maximumf %57, %58 : vector<16x1xf32>
    %60 = math.sqrt %59 : vector<16x1xf32>
    %61 = arith.mulf %55, %60 : vector<16x1xf32>
    %cst_23 = arith.constant 0.000000e+00 : f32
    %62 = vector.broadcast %cst_23 : f32 to vector<16x1xf32>
    %63 = arith.cmpf oge, %32, %62 : vector<16x1xf32>
    %cst_24 = arith.constant 3.14159274 : f32
    %64 = vector.broadcast %cst_24 : f32 to vector<16x1xf32>
    %65 = arith.subf %64, %61 : vector<16x1xf32>
    %66 = arith.select %63, %61, %65 : vector<16x1xi1>, vector<16x1xf32>
    %cst_25 = arith.constant 3.500000e-01 : f32
    %67 = vector.broadcast %cst_25 : f32 to vector<16x1xf32>
    %68 = arith.mulf %67, %66 : vector<16x1xf32>
    %69 = arith.mulf %68, %68 : vector<16x1xf32>
    %cst_26 = arith.constant 4.77947726E-14 : f32
    %70 = vector.broadcast %cst_26 : f32 to vector<16x1xf32>
    %71 = arith.mulf %70, %69 : vector<16x1xf32>
    %cst_27 = arith.constant -1.14707454E-11 : f32
    %72 = vector.broadcast %cst_27 : f32 to vector<16x1xf32>
    %73 = arith.addf %71, %72 : vector<16x1xf32>
    %74 = arith.mulf %73, %69 : vector<16x1xf32>
    %cst_28 = arith.constant 2.08767559E-9 : f32
    %75 = vector.broadcast %cst_28 : f32 to vector<16x1xf32>
    %76 = arith.addf %74, %75 : vector<16x1xf32>
    %77 = arith.mulf %76, %69 : vector<16x1xf32>
    %cst_29 = arith.constant -2.755732E-7 : f32
    %78 = vector.broadcast %cst_29 : f32 to vector<16x1xf32>
    %79 = arith.addf %77, %78 : vector<16x1xf32>
    %80 = arith.mulf %79, %69 : vector<16x1xf32>
    %cst_30 = arith.constant 2.48015876E-5 : f32
    %81 = vector.broadcast %cst_30 : f32 to vector<16x1xf32>
    %82 = arith.addf %80, %81 : vector<16x1xf32>
    %83 = arith.mulf %82, %69 : vector<16x1xf32>
    %cst_31 = arith.constant -0.00138888892 : f32
    %84 = vector.broadcast %cst_31 : f32 to vector<16x1xf32>
    %85 = arith.addf %83, %84 : vector<16x1xf32>
    %86 = arith.mulf %85, %69 : vector<16x1xf32>
    %cst_32 = arith.constant 0.0416666679 : f32
    %87 = vector.broadcast %cst_32 : f32 to vector<16x1xf32>
    %88 = arith.addf %86, %87 : vector<16x1xf32>
    %89 = arith.mulf %88, %69 : vector<16x1xf32>
    %cst_33 = arith.constant -5.000000e-01 : f32
    %90 = vector.broadcast %cst_33 : f32 to vector<16x1xf32>
    %91 = arith.addf %89, %90 : vector<16x1xf32>
    %92 = arith.mulf %91, %69 : vector<16x1xf32>
    %cst_34 = arith.constant 1.000000e+00 : f32
    %93 = vector.broadcast %cst_34 : f32 to vector<16x1xf32>
    %94 = arith.addf %92, %93 : vector<16x1xf32>
    %cst_35 = arith.constant 2.81145736E-15 : f32
    %95 = vector.broadcast %cst_35 : f32 to vector<16x1xf32>
    %96 = arith.mulf %95, %69 : vector<16x1xf32>
    %cst_36 = arith.constant -7.6471636E-13 : f32
    %97 = vector.broadcast %cst_36 : f32 to vector<16x1xf32>
    %98 = arith.addf %96, %97 : vector<16x1xf32>
    %99 = arith.mulf %98, %69 : vector<16x1xf32>
    %cst_37 = arith.constant 1.60590444E-10 : f32
    %100 = vector.broadcast %cst_37 : f32 to vector<16x1xf32>
    %101 = arith.addf %99, %100 : vector<16x1xf32>
    %102 = arith.mulf %101, %69 : vector<16x1xf32>
    %cst_38 = arith.constant -2.50521079E-8 : f32
    %103 = vector.broadcast %cst_38 : f32 to vector<16x1xf32>
    %104 = arith.addf %102, %103 : vector<16x1xf32>
    %105 = arith.mulf %104, %69 : vector<16x1xf32>
    %cst_39 = arith.constant 2.75573188E-6 : f32
    %106 = vector.broadcast %cst_39 : f32 to vector<16x1xf32>
    %107 = arith.addf %105, %106 : vector<16x1xf32>
    %108 = arith.mulf %107, %69 : vector<16x1xf32>
    %cst_40 = arith.constant -1.98412701E-4 : f32
    %109 = vector.broadcast %cst_40 : f32 to vector<16x1xf32>
    %110 = arith.addf %108, %109 : vector<16x1xf32>
    %111 = arith.mulf %110, %69 : vector<16x1xf32>
    %cst_41 = arith.constant 0.00833333377 : f32
    %112 = vector.broadcast %cst_41 : f32 to vector<16x1xf32>
    %113 = arith.addf %111, %112 : vector<16x1xf32>
    %114 = arith.mulf %113, %69 : vector<16x1xf32>
    %cst_42 = arith.constant -0.166666672 : f32
    %115 = vector.broadcast %cst_42 : f32 to vector<16x1xf32>
    %116 = arith.addf %114, %115 : vector<16x1xf32>
    %117 = arith.mulf %116, %69 : vector<16x1xf32>
    %cst_43 = arith.constant 1.000000e+00 : f32
    %118 = vector.broadcast %cst_43 : f32 to vector<16x1xf32>
    %119 = arith.addf %117, %118 : vector<16x1xf32>
    %120 = arith.mulf %68, %119 : vector<16x1xf32>
    %121 = arith.mulf %32, %32 : vector<16x1xf32>
    %cst_44 = arith.constant 1.000000e+00 : f32
    %122 = vector.broadcast %cst_44 : f32 to vector<16x1xf32>
    %123 = arith.subf %122, %121 : vector<16x1xf32>
    %cst_45 = arith.constant 0.000000e+00 : f32
    %124 = vector.broadcast %cst_45 : f32 to vector<16x1xf32>
    %125 = arith.maximumf %123, %124 : vector<16x1xf32>
    %126 = math.sqrt %125 : vector<16x1xf32>
    %127 = arith.mulf %32, %94 : vector<16x1xf32>
    %128 = arith.mulf %126, %120 : vector<16x1xf32>
    %129 = arith.subf %127, %128 : vector<16x1xf32>
    %130 = vector.shape_cast %129 : vector<16x1xf32> to vector<16x1xf32>
    %131 = vector.broadcast %130 : vector<16x1xf32> to vector<16x32xf32>
    %132 = arith.select %24, %131, %17 : vector<16x32xi1>, vector<16x32xf32>
    %cst_46 = arith.constant 3.000000e+01 : f32
    %133 = vector.broadcast %cst_46 : f32 to vector<16x32xf32>
    %134 = arith.mulf %132, %133 : vector<16x32xf32>
    %c0_47 = arith.constant 0 : index
    %c0_48 = arith.constant 0 : index
    %135 = vector.load %arg5[%c0_47, %c0_48] : memref<16x32xf32, #tpu.memory_space<vmem>>, vector<16x32xf32>
    tpu.vector_store %arg5[%c0_47, %c0_48], %134 {strides = array<i32>} : memref<16x32xf32, #tpu.memory_space<vmem>>, vector<16x32xf32>,
    return
  }
  func.func @transform_0(%arg0: i32, %arg1: i32) -> (i32, i32) {
    %c0_i32 = arith.constant 0 : i32
    %c0_i32_0 = arith.constant 0 : i32
    return %arg0, %c0_i32 : i32, i32
  }
  func.func @transform_1(%arg0: i32, %arg1: i32) -> (i32, i32) {
    %c0_i32 = arith.constant 0 : i32
    %c0_i32_0 = arith.constant 0 : i32
    return %arg1, %c0_i32 : i32, i32
  }
  func.func @transform_2(%arg0: i32, %arg1: i32) -> (i32, i32) {
    %c0_i32 = arith.constant 0 : i32
    %c0_i32_0 = arith.constant 0 : i32
    return %arg0, %c0_i32 : i32, i32
  }
  func.func @transform_3(%arg0: i32, %arg1: i32) -> (i32, i32) {
    %c0_i32 = arith.constant 0 : i32
    return %arg0, %arg1 : i32, i32
  }
}

</mosaic_0001>

<bundles_post_ra>
// kernel: tpu_custom_call.1
= control target key start
LH: loop header
LB: loop body
LE: loop exit
PB: predicated region body
PF: predicated region fallthrough
CT: control target
= control target key end

     0   :  { %8 = vsyncpa [#allocation3], 0  ;;  %s656_s0 = inlined_call_operand.vmem [shape: f32[16,64], index: 0, kind: input, shape index: {}]   ;;  %s657_s1 = inlined_call_operand.hbm [shape: f32[32,64], index: 1, kind: input, shape index: {}]   ;;  %s658_s2 = inlined_call_operand.vmem [shape: s32[16,1], index: 2, kind: input, shape index: {}]   ;;  %s659_s3 = inlined_call_operand.hbm [shape: f32[16,32], index: 3, kind: output, shape index: {}]  }
   0x1   :  { %9 = vsyncpa [#allocation4], 0  ;;  %s473_s12 = smov [#allocation2]  }
   0x2   :  { %s17_s13 = sshll.u32 %s473_s12, 4  ;;  %s18_s13 = int_to_ptr.vmem [resolvable:$true] %s17_s13 }
   0x3   :  { %s437_s14 = scalar_lea.vmem %s18_s13, 512  ;;  %p442_p1 = scmp.lt.s32.totalorder %s18_s13, %s18_s13 }
   0x4   :  { %p438_p0 = scmp.ne.s32.totalorder %s18_s13, %s437_s14  ;;  %p443_p2 = scmp.lt.s32.totalorder %s437_s14, %s437_s14 }
   0x6   :  { %p444_p3 = por %p443_p2, %p442_p1 }
   0x8   :  { %p445_p4 = pnand %p444_p3, %p438_p0 }
   0xa   :  { %448 = shalt.err (!%p445_p4)
}
   0xb   :  { %s474_s15 = smov 128   ;;  %s475_s16 = smov 8  }
   0xc   :  { %23 = dma.hbm_to_vmem [thread:$0]  %s657_s1, 512, %s18_s13, [#allocation3], %s474_s15, %s474_s15, %s475_s16  }
   0xd   :  { %469 = dma.done.wait [#allocation3], 512  }
   0xe   :  { %470 = vsyncadd [#allocation3], 4294966784  ;;  %v32_v0 = vld [vmem:[#allocation2 + $0x18] sm:$0xff]  ;;  %vm37_vm0 = vcmask 523264   ;;  %v504_v1 = vld [vmem:[#allocation2 + $0x8] sm:$0xff]  ;;  %v476_v15 = vmov 0   ;;  %v183_v53 = vlaneseq }
   0xf   :  { %v31_v2 = vld [vmem:[#allocation2 + $0x10] sm:$0xff]  ;;  %v36_v3 = vmul.f32 %v32_v0, %v32_v0  ;;  %v34_v4 = vmul.f32 %v504_v1, %v504_v1  ;;  %v508_v6 = vld [vmem:[#allocation2] sm:$0xff]  ;;  %v178_v13 = vld [vmem:[%s658_s2 + $0x8] sm:$0xff]  ;;  %412 = vset.pattern.permute.xlu1 %v476_v15  ;;  %411 = vset.pattern.permute.xlu0 %v476_v15  ;;  %vm195_vm2 = vcmask 261120  }
  0x10   :  { %v35_v5 = vmul.f32 %v31_v2, %v31_v2  ;;  %v33_v7 = vmul.f32 %v508_v6, %v508_v6  ;;  %v82_v12 = vld [vmem:[%s656_s0] sm:$0xff]  ;;  %v83_v52 = vld [vmem:[%s656_s0 + $0x8] sm:$0xff]  ;;  %v540_v54 = vand.u32 127, %v183_v53  ;;  %s477_s0 = smov [#allocation5]  }
  0x11   :  { %v47_v8 = vsel %vm37_vm0, %v36_v3, 0.0  ;;  %v41_v9 = vsel %vm37_vm0, %v34_v4, 0.0  ;;  %403 = vmatprep.mubr.msk.f32.mxu0 %vm37_vm0, %v82_v12  ;;  %v177_v14 = vld [vmem:[%s658_s2] sm:$0xff]  ;;  %s369_s25 = sshll.u32 %s477_s0, 4  ;;  %s370_s25 = int_to_ptr.vmem [resolvable:$true] %s369_s25 }
  0x12   :  { %48 = vadd.xlane.f32.xlu0 %v47_v8  ;;  %42 = vadd.xlane.f32.xlu1 %v41_v9  ;;  %v44_v10 = vsel %vm37_vm0, %v35_v5, 0.0  ;;  %v38_v11 = vsel %vm37_vm0, %v33_v7, 0.0  ;;  %s449_s26 = scalar_lea.vmem %s370_s25, 256  ;;  %p454_p6 = scmp.lt.s32.totalorder %s370_s25, %s370_s25 }
  0x13   :  { %p450_p5 = scmp.ne.s32.totalorder %s370_s25, %s449_s26  ;;  %p455_p7 = scmp.lt.s32.totalorder %s449_s26, %s449_s26 }
  0x15   :  { %p456_p8 = por %p455_p7, %p454_p6 }
  0x16   :  { %45 = vadd.xlane.f32.xlu0 %v44_v10  ;;  %39 = vadd.xlane.f32.xlu1 %v38_v11 }
  0x17   :  { %p457_p9 = pnand %p456_p8, %p450_p5 }
  0x27   :  { %189 = vperm.xlu1 %412, %v178_v13  }
  0x2c   :  { %186 = vperm.xlu0 %411, %v177_v14  }
  0x9b   :  { %v49_v16 = vpop.xlane.xlu0 %48  ;;  %v43_v17 = vpop.xlane.xlu1 %42 }
  0x9c   :  { %v53_v18 = vmax.f32 %v49_v16, 1e-24  ;;  %v51_v19 = vmax.f32 %v43_v17, 1e-24 }
  0x9e   :  { %413 = vrsqrt.f32 %v53_v18  ;;  %v61_v24 = vmul.f32 0.5, %v53_v18  ;;  %v59_v26 = vmul.f32 0.5, %v51_v19 }
  0x9f   :  { %415 = vrsqrt.f32 %v51_v19  ;;  %v46_v20 = vpop.xlane.xlu0 %45  ;;  %v40_v21 = vpop.xlane.xlu1 %39 }
  0xa0   :  { %v52_v22 = vmax.f32 %v46_v20, 1e-24  ;;  %v50_v23 = vmax.f32 %v40_v21, 1e-24 }
  0xa2   :  { %417 = vrsqrt.f32 %v52_v22  ;;  %v60_v30 = vmul.f32 0.5, %v52_v22  ;;  %v58_v34 = vmul.f32 0.5, %v50_v23 }
  0xa3   :  { %419 = vrsqrt.f32 %v50_v23  ;;  %v542_v55 = vpop.permute.xlu1 %189 }
  0xa4   :  { %vm192_vm1 = vcmp.eq.s32.totalorder %v540_v54, %v542_v55 }
  0xa7   :  { %v544_v56 = vpop.permute.xlu0 %186 }
  0xa8   :  { %vm191_vm3 = vcmp.eq.s32.totalorder %v540_v54, %v544_v56 }
  0xab   :  { %v414_v25 = vpop.eup %413 }
  0xac   :  { %v416_v27 = vpop.eup %415  ;;  %v65_v28 = vmul.f32 %v414_v25, %v61_v24 }
  0xad   :  { %v63_v29 = vmul.f32 %v416_v27, %v59_v26 }
  0xae   :  { %v69_v31 = vmul.f32 %v414_v25, %v65_v28 }
  0xaf   :  { %v418_v32 = vpop.eup %417  ;;  %v67_v33 = vmul.f32 %v416_v27, %v63_v29 }
  0xb0   :  { %v420_v35 = vpop.eup %419  ;;  %v64_v36 = vmul.f32 %v418_v32, %v60_v30  ;;  %v73_v37 = vsub.f32 1.5, %v69_v31 }
  0xb1   :  { %v62_v38 = vmul.f32 %v420_v35, %v58_v34  ;;  %v71_v39 = vsub.f32 1.5, %v67_v33 }
  0xb2   :  { %v68_v40 = vmul.f32 %v418_v32, %v64_v36  ;;  %v77_v41 = vmul.f32 %v414_v25, %v73_v37 }
  0xb3   :  { %v66_v42 = vmul.f32 %v420_v35, %v62_v38  ;;  %v75_v45 = vmul.f32 %v416_v27, %v71_v39 }
  0xb4   :  { %v72_v43 = vsub.f32 1.5, %v68_v40  ;;  %v81_v44 = vmul.f32 %v77_v41, %v32_v0 }
  0xb5   :  { %v70_v47 = vsub.f32 1.5, %v66_v42  ;;  %v79_v50 = vmul.f32 %v75_v45, %v504_v1 }
  0xb6   :  { %v76_v46 = vmul.f32 %v418_v32, %v72_v43  ;;  %395 = vmatprep.subr.msk.mxu0 %vm37_vm0, %v81_v44 }
  0xb7   :  { %396 = vmatpush3.xpose.msk.msra.mxu0 %vm37_vm0, %v81_v44  ;;  %v74_v49 = vmul.f32 %v420_v35, %v70_v47 }
  0xb8   :  { %v80_v48 = vmul.f32 %v76_v46, %v31_v2 }
  0xb9   :  { %v78_v51 = vmul.f32 %v74_v49, %v508_v6 }
  0xba   :  { %397 = vmatprep.subr.msk.mxu0 %vm37_vm0, %v80_v48 }
  0xbb   :  { %398 = vmatpush3.xpose.msk.msra.mxu0 %vm37_vm0, %v80_v48 }
  0xbc   :  { %399 = vmatprep.subr.msk.mxu0 %vm37_vm0, %v79_v50 }
  0xbf   :  { %400 = vmatpush3.xpose.msk.msra.mxu0 %vm37_vm0, %v79_v50 }
  0xc0   :  { %401 = vmatprep.subr.msk.mxu0 %vm37_vm0, %v78_v51 }
  0xc3   :  { %402 = vmatpush3.xpose.msk.msra.mxu0 %vm37_vm0, %v78_v51 }
  0xc6   :  { %404 = vmatmul.mubr.msk.f32.vlgmr.msra.gmra.mxu0 %vm37_vm0, %v83_v52 }
 0x186   :  { %v548_v57 = vpop.f32.mrf.mxu0 }
 0x187   :  { %v194_v58 = vsel %vm192_vm1, %v548_v57, 0.0 }
 0x188   :  { %v556_v59 = vpop.f32.mrf.mxu0  ;;  %v199_v60 = vsel %vm195_vm2, %v194_v58, 0.0 }
 0x189   :  { %v193_v61 = vsel %vm191_vm3, %v556_v59, 0.0  ;;  %200 = vadd.xlane.f32.xlu0 %v199_v60 }
 0x18a   :  { %v196_v62 = vsel %vm195_vm2, %v193_v61, 0.0 }
 0x18b   :  { %197 = vadd.xlane.f32.xlu1 %v196_v62 }
 0x212   :  { %v201_v63 = vpop.xlane.xlu0 %200 }
 0x213   :  { %v564_v0 = vclamps-f32 %v201_v63, 0.9999999 }
 0x214   :  { %v198_v1 = vpop.xlane.xlu1 %197 }
 0x215   :  { %v207_v2 = vand.u32 2147483647, %v564_v0  ;;  %v567_v3 = vclamps-f32 %v198_v1, 0.9999999  ;;  %vm257_vm8 = vcmp.ge.f32.partialorder %v564_v0, 0.0  ;;  %v333_v52 = vmul.f32 %v564_v0, %v564_v0 }
 0x217   :  { %v209_v4 = vmul.f32 -0.0012624911, %v207_v2  ;;  %v237_v5 = vsub.f32 1.0, %v207_v2  ;;  %v206_v6 = vand.u32 2147483647, %v567_v3  ;;  %vm256_vm9 = vcmp.ge.f32.partialorder %v567_v3, 0.0 }
 0x218   :  { %v335_v1 = vsub.f32 1.0, %v333_v52 }
 0x219   :  { %v211_v7 = vadd.f32 0.00667009, %v209_v4  ;;  %v239_v8 = vmax.f32 %v237_v5, 0.0  ;;  %v208_v9 = vmul.f32 -0.0012624911, %v206_v6  ;;  %v236_v10 = vsub.f32 1.0, %v206_v6 }
 0x21b   :  { %v213_v11 = vmul.f32 %v211_v7, %v207_v2  ;;  %421 = vrsqrt.f32 %v239_v8  ;;  %v210_v13 = vadd.f32 0.00667009, %v208_v9  ;;  %v238_v14 = vmax.f32 %v236_v10, 0.0 }
 0x21c   :  { %vm249_vm4 = vcmp.eq.f32.partialorder %v239_v8, inf  ;;  %v252_v38 = vand.u32 2147483648, %v239_v8  ;;  %vm251_vm5 = vcmp.eq.f32.partialorder %v239_v8, 0.0 }
 0x21d   :  { %v215_v12 = vadd.f32 -0.017088126, %v213_v11  ;;  %v212_v16 = vmul.f32 %v210_v13, %v206_v6  ;;  %423 = vrsqrt.f32 %v238_v14  ;;  %vm242_vm6 = vcmp.eq.f32.partialorder %v238_v14, inf }
 0x21e   :  { %v245_v45 = vand.u32 2147483648, %v238_v14  ;;  %vm244_vm7 = vcmp.eq.f32.partialorder %v238_v14, 0.0  ;;  %v594_v11 = vmax.f32 %v335_v1, 0.0 }
 0x21f   :  { %v217_v15 = vmul.f32 %v215_v12, %v207_v2  ;;  %v214_v18 = vadd.f32 -0.017088126, %v212_v16 }
 0x220   :  { %425 = vrsqrt.f32 %v594_v11  ;;  %vm347_vm10 = vcmp.eq.f32.partialorder %v594_v11, inf  ;;  %vm349_vm11 = vcmp.eq.f32.partialorder %v594_v11, 0.0 }
 0x221   :  { %v219_v17 = vadd.f32 0.03089188, %v217_v15  ;;  %v216_v20 = vmul.f32 %v214_v18, %v206_v6 }
 0x223   :  { %v221_v19 = vmul.f32 %v219_v17, %v207_v2  ;;  %v218_v22 = vadd.f32 0.03089188, %v216_v20 }
 0x225   :  { %v223_v21 = vadd.f32 -0.050174303, %v221_v19  ;;  %v220_v24 = vmul.f32 %v218_v22, %v206_v6 }
 0x227   :  { %v225_v23 = vmul.f32 %v223_v21, %v207_v2  ;;  %v222_v27 = vadd.f32 -0.050174303, %v220_v24 }
 0x228   :  { %v422_v25 = vpop.eup %421 }
 0x229   :  { %v227_v26 = vadd.f32 0.08897899, %v225_v23  ;;  %v248_v29 = vmul.f32 %v422_v25, %v239_v8  ;;  %v224_v30 = vmul.f32 %v222_v27, %v206_v6 }
 0x22a   :  { %v424_v31 = vpop.eup %423 }
 0x22b   :  { %v229_v28 = vmul.f32 %v227_v26, %v207_v2  ;;  %v226_v33 = vadd.f32 0.08897899, %v224_v30  ;;  %v250_v35 = vsel %vm249_vm4, %v239_v8, %v248_v29  ;;  %v241_v37 = vmul.f32 %v424_v31, %v238_v14 }
 0x22c   :  { %v253_v41 = vsel %vm251_vm5, %v252_v38, %v250_v35 }
 0x22d   :  { %v231_v32 = vadd.f32 -0.2145988, %v229_v28  ;;  %v228_v36 = vmul.f32 %v226_v33, %v206_v6  ;;  %v243_v44 = vsel %vm242_vm6, %v238_v14, %v241_v37 }
 0x22e   :  { %v246_v48 = vsel %vm244_vm7, %v245_v45, %v243_v44 }
 0x22f   :  { %v233_v34 = vmul.f32 %v231_v32, %v207_v2  ;;  %v230_v40 = vadd.f32 -0.2145988, %v228_v36 }
 0x231   :  { %v235_v39 = vadd.f32 1.5707963, %v233_v34  ;;  %v232_v43 = vmul.f32 %v230_v40, %v206_v6  ;;  %v332_v6 = vmul.f32 %v567_v3, %v567_v3 }
 0x233   :  { %v255_v42 = vmul.f32 %v253_v41, %v235_v39  ;;  %v234_v47 = vadd.f32 1.5707963, %v232_v43  ;;  %v334_v16 = vsub.f32 1.0, %v332_v6 }
 0x235   :  { %v259_v46 = vsub.f32 3.1415927, %v255_v42  ;;  %v254_v50 = vmul.f32 %v246_v48, %v234_v47  ;;  %v601_v25 = vmax.f32 %v334_v16, 0.0 }
 0x237   :  { %v261_v49 = vsel %vm257_vm8, %v255_v42, %v259_v46  ;;  %v258_v53 = vsub.f32 3.1415927, %v254_v50  ;;  %427 = vrsqrt.f32 %v601_v25  ;;  %vm340_vm12 = vcmp.eq.f32.partialorder %v601_v25, inf }
 0x238   :  { %v571_v51 = vmul.f32 0.35, %v261_v49  ;;  %v426_v49 = vpop.eup %425  ;;  %vm342_vm13 = vcmp.eq.f32.partialorder %v601_v25, 0.0 }
 0x239   :  { %v260_v60 = vsel %vm256_vm9, %v254_v50, %v258_v53 }
 0x23a   :  { %v577_v58 = vmul.f32 %v571_v51, %v571_v51  ;;  %v582_v63 = vmul.f32 0.35, %v260_v60 }
 0x23c   :  { %v267_v61 = vmul.f32 4.7794773e-14, %v577_v58  ;;  %v299_v62 = vmul.f32 2.8114574e-15, %v577_v58  ;;  %v586_v5 = vmul.f32 %v582_v63, %v582_v63 }
 0x23e   :  { %v269_v2 = vadd.f32 -1.1470745e-11, %v267_v61  ;;  %v301_v4 = vadd.f32 -7.6471636e-13, %v299_v62  ;;  %v266_v9 = vmul.f32 4.7794773e-14, %v586_v5 }
 0x23f   :  { %v298_v10 = vmul.f32 2.8114574e-15, %v586_v5 }
 0x240   :  { %v271_v7 = vmul.f32 %v269_v2, %v577_v58  ;;  %v303_v8 = vmul.f32 %v301_v4, %v577_v58  ;;  %v268_v14 = vadd.f32 -1.1470745e-11, %v266_v9  ;;  %v346_v2 = vmul.f32 %v426_v49, %v594_v11 }
 0x241   :  { %v300_v15 = vadd.f32 -7.6471636e-13, %v298_v10 }
 0x242   :  { %v273_v12 = vadd.f32 2.0876756e-09, %v271_v7  ;;  %v305_v13 = vadd.f32 1.6059044e-10, %v303_v8  ;;  %v270_v19 = vmul.f32 %v268_v14, %v586_v5 }
 0x243   :  { %v302_v20 = vmul.f32 %v300_v15, %v586_v5  ;;  %v348_v15 = vsel %vm347_vm10, %v594_v11, %v346_v2 }
 0x244   :  { %v275_v17 = vmul.f32 %v273_v12, %v577_v58  ;;  %v307_v18 = vmul.f32 %v305_v13, %v577_v58  ;;  %v272_v23 = vadd.f32 2.0876756e-09, %v270_v19  ;;  %v428_v7 = vpop.eup %427 }
 0x245   :  { %v304_v24 = vadd.f32 1.6059044e-10, %v302_v20  ;;  %v339_v19 = vmul.f32 %v428_v7, %v601_v25 }
 0x246   :  { %v277_v21 = vadd.f32 -2.755732e-07, %v275_v17  ;;  %v309_v22 = vadd.f32 -2.5052108e-08, %v307_v18  ;;  %v274_v28 = vmul.f32 %v272_v23, %v586_v5  ;;  %v350_v17 = vand.u32 2147483648, %v594_v11 }
 0x247   :  { %v306_v29 = vmul.f32 %v304_v24, %v586_v5 }
 0x248   :  { %v279_v26 = vmul.f32 %v277_v21, %v577_v58  ;;  %v311_v27 = vmul.f32 %v309_v22, %v577_v58  ;;  %v276_v32 = vadd.f32 -2.755732e-07, %v274_v28  ;;  %v351_v21 = vsel %vm349_vm11, %v350_v17, %v348_v15 }
 0x249   :  { %v308_v33 = vadd.f32 -2.5052108e-08, %v306_v29  ;;  %v341_v28 = vsel %vm340_vm12, %v601_v25, %v339_v19 }
 0x24a   :  { %v281_v30 = vadd.f32 2.4801588e-05, %v279_v26  ;;  %v313_v31 = vadd.f32 2.7557319e-06, %v311_v27  ;;  %v278_v36 = vmul.f32 %v276_v32, %v586_v5 }
 0x24b   :  { %v310_v37 = vmul.f32 %v308_v33, %v586_v5 }
 0x24c   :  { %v283_v34 = vmul.f32 %v281_v30, %v577_v58  ;;  %v315_v35 = vmul.f32 %v313_v31, %v577_v58  ;;  %v280_v40 = vadd.f32 2.4801588e-05, %v278_v36  ;;  %v343_v30 = vand.u32 2147483648, %v601_v25 }
 0x24d   :  { %v312_v41 = vadd.f32 2.7557319e-06, %v310_v37 }
 0x24e   :  { %v285_v38 = vadd.f32 -0.0013888889, %v283_v34  ;;  %v317_v39 = vadd.f32 -0.0001984127, %v315_v35  ;;  %v282_v44 = vmul.f32 %v280_v40, %v586_v5  ;;  %v344_v11 = vsel %vm342_vm13, %v343_v30, %v341_v28 }
 0x24f   :  { %v314_v45 = vmul.f32 %v312_v41, %v586_v5 }
 0x250   :  { %v287_v42 = vmul.f32 %v285_v38, %v577_v58  ;;  %v319_v43 = vmul.f32 %v317_v39, %v577_v58  ;;  %v284_v48 = vadd.f32 -0.0013888889, %v282_v44 }
 0x251   :  { %v316_v50 = vadd.f32 -0.0001984127, %v314_v45 }
 0x252   :  { %v289_v46 = vadd.f32 0.041666668, %v287_v42  ;;  %v321_v47 = vadd.f32 0.008333334, %v319_v43  ;;  %v286_v60 = vmul.f32 %v284_v48, %v586_v5 }
 0x253   :  { %v318_v61 = vmul.f32 %v316_v50, %v586_v5 }
 0x254   :  { %v291_v52 = vmul.f32 %v289_v46, %v577_v58  ;;  %v323_v53 = vmul.f32 %v321_v47, %v577_v58  ;;  %v288_v4 = vadd.f32 0.041666668, %v286_v60 }
 0x255   :  { %v320_v6 = vadd.f32 0.008333334, %v318_v61 }
 0x256   :  { %v293_v62 = vadd.f32 -0.5, %v291_v52  ;;  %v325_v1 = vadd.f32 -0.16666667, %v323_v53  ;;  %v290_v10 = vmul.f32 %v288_v4, %v586_v5 }
 0x257   :  { %v322_v12 = vmul.f32 %v320_v6, %v586_v5 }
 0x258   :  { %v295_v8 = vmul.f32 %v293_v62, %v577_v58  ;;  %v327_v9 = vmul.f32 %v325_v1, %v577_v58  ;;  %v292_v16 = vadd.f32 -0.5, %v290_v10 }
 0x259   :  { %v324_v18 = vadd.f32 -0.16666667, %v322_v12 }
 0x25a   :  { %v297_v13 = vadd.f32 1.0, %v295_v8  ;;  %v329_v14 = vadd.f32 1.0, %v327_v9  ;;  %v294_v58 = vmul.f32 %v292_v16, %v586_v5 }
 0x25b   :  { %v326_v22 = vmul.f32 %v324_v18, %v586_v5 }
 0x25c   :  { %v331_v20 = vmul.f32 %v329_v14, %v571_v51  ;;  %v353_v23 = vmul.f32 %v564_v0, %v297_v13  ;;  %v296_v26 = vadd.f32 1.0, %v294_v58 }
 0x25d   :  { %v328_v27 = vadd.f32 1.0, %v326_v22 }
 0x25e   :  { %v355_v24 = vmul.f32 %v351_v21, %v331_v20  ;;  %v352_v5 = vmul.f32 %v567_v3, %v296_v26 }
 0x25f   :  { %v330_v51 = vmul.f32 %v328_v27, %v582_v63 }
 0x260   :  { %v357_v29 = vsub.f32 %v353_v23, %v355_v24 }
 0x261   :  { %v354_v31 = vmul.f32 %v344_v11, %v330_v51 }
 0x262   :  { %v359_v0 = vsel %vm192_vm1, %v357_v29, %v548_v57 }
 0x263   :  { %v361_v32 = vmul.f32 30.0, %v359_v0  ;;  %v356_v33 = vsub.f32 %v352_v5, %v354_v31 }
 0x265   :  { %363 = vst.msk [vmem:[#allocation5 + $0x8] sm:$0xff] %vm195_vm2, %v361_v32  ;;  %v358_v63 = vsel %vm191_vm3, %v356_v33, %v556_v59 }
 0x266   :  { %v360_v25 = vmul.f32 30.0, %v358_v63 }
 0x268   :  { %362 = vst.msk [vmem:[#allocation5] sm:$0xff] %vm195_vm2, %v360_v25 }
 0x269   :  { %460 = shalt.err (!%p457_p9)
}
 0x26a   :  { %375 = dma.vmem_to_hbm [thread:$0]  %s370_s25, 256, %s659_s3, [#allocation4], %s474_s15, %s474_s15, %s475_s16  }
 0x26b   :  { %471 = dma.done.wait [#allocation4], 256  }
 0x26c   :  { %472 = vsyncadd [#allocation4], 4294967040 }
 0x26d   :  { %379 = vsyncpa [#allocation3], 1 }
 0x26e   :  { %380 = vsyncpa [#allocation4], 1 }

</bundles_post_ra>
